<compile_context>
chip_gen: v7x
topology: tpu7x:2x2x1
jax: 0.10.0
libtpu: 0.0.40
codegen_flags: <defaults>
</compile_context>

<pallas_src>
import functools

import jax
import jax.numpy as jnp
from jax.experimental import pallas as pl
from jax.experimental.pallas import tpu as pltpu


LATENT_DIM = 32   # stand-in for opt.latent_dim
H1, H2, OUT = 64, 128, 256


def _round_up(x, m):
    return ((x + m - 1) // m) * m


def _leaky_relu(x, slope=0.02):
    return jnp.where(x > 0, x, slope * x)


def generator2_kernel(z_ref, w1_ref, b1_ref, w2_ref, b2_ref, w3_ref, b3_ref,
                      o_ref):
    # z block is (TB, LATENT_DIM) f32; weights are bf16 (in, out); biases f32 (1, N).
    z = z_ref[...]

    # Layer 1: Linear(latent_dim -> 64) + LeakyReLU(0.02)
    h1 = jnp.dot(z.astype(jnp.bfloat16), w1_ref[...],
                 preferred_element_type=jnp.float32) + b1_ref[...]
    h1 = _leaky_relu(h1)

    # Layer 2: Linear(64 -> 128) + LeakyReLU(0.02)
    h2 = jnp.dot(h1.astype(jnp.bfloat16), w2_ref[...],
                 preferred_element_type=jnp.float32) + b2_ref[...]
    h2 = _leaky_relu(h2)

    # Layer 3: Linear(128 -> 256) + Sigmoid
    h3 = jnp.dot(h2.astype(jnp.bfloat16), w3_ref[...],
                 preferred_element_type=jnp.float32) + b3_ref[...]
    o_ref[...] = jax.nn.sigmoid(h3).astype(o_ref.dtype)


@functools.partial(jax.jit, static_argnames=("tb",))
def generator2_forward(z, params, *, tb=512):
    """z: (B, LATENT_DIM) f32 -> (B, 256) f32 (== view(B, *image_shape2))."""
    w1, b1, w2, b2, w3, b3 = params
    B = z.shape[0]

    # Batch block: multiple of 8 (sublane), capped at `tb` (amortizes per-step
    # grid overhead while keeping per-step VMEM small).
    TB = min(tb, _round_up(B, 8))
    Bp = _round_up(B, TB)
    if Bp != B:
        z = jnp.pad(z, ((0, Bp - B), (0, 0)))
    grid = (Bp // TB,)

    # z / out are tiled along batch; weights & biases stay VMEM-resident
    # (constant block index across grid steps -> DMA'd once).
    resident = lambda shape: pl.BlockSpec(shape, lambda i: (0, 0))

    cost = pl.CostEstimate(
        flops=2 * Bp * (LATENT_DIM * H1 + H1 * H2 + H2 * OUT),
        transcendentals=Bp * OUT,  # sigmoid
        bytes_accessed=(
            Bp * LATENT_DIM * 4 + Bp * OUT * 4                      # z + out
            + (LATENT_DIM * H1 + H1 * H2 + H2 * OUT) * 2            # bf16 W
            + (H1 + H2 + OUT) * 4),                                  # f32 b
    )

    out = pl.pallas_call(
        generator2_kernel,
        out_shape=jax.ShapeDtypeStruct((Bp, OUT), jnp.float32),
        grid=grid,
        in_specs=[
            pl.BlockSpec((TB, LATENT_DIM), lambda i: (i, 0)),
            resident(w1.shape), resident(b1.shape),
            resident(w2.shape), resident(b2.shape),
            resident(w3.shape), resident(b3.shape),
        ],
        out_specs=pl.BlockSpec((TB, OUT), lambda i: (i, 0)),
        compiler_params=pltpu.CompilerParams(
            dimension_semantics=("parallel",),
            vmem_limit_bytes=32 << 20,
        ),
        cost_estimate=cost,
    )(z, w1, b1, w2, b2, w3, b3)

    # img2 = img2.view(img2.size(0), *image_shape2); image_shape2 == (256,)
    return out[:B].reshape(B, 256)


def init_params(key):
    """Deterministic init mimicking torch.nn.Linear default
    (U(-1/sqrt(fan_in), +1/sqrt(fan_in))).
    Weights are stored pre-transposed as (in_features, out_features) == W^T,
    in bf16 for the MXU; biases stay f32 with shape (1, out_features)."""
    def linear(key, fan_in, fan_out):
        kw, kb = jax.random.split(key)
        bound = 1.0 / jnp.sqrt(jnp.float32(fan_in))
        w = jax.random.uniform(kw, (fan_in, fan_out), jnp.float32, -bound, bound)
        b = jax.random.uniform(kb, (1, fan_out), jnp.float32, -bound, bound)
        return w.astype(jnp.bfloat16), b

    k1, k2, k3 = jax.random.split(key, 3)
    w1, b1 = linear(k1, LATENT_DIM, H1)
    w2, b2 = linear(k2, H1, H2)
    w3, b3 = linear(k3, H2, OUT)
    return (w1, b1, w2, b2, w3, b3)


def reference_forward(z, params):
    """Pure-JAX f32 reference (weights upcast from bf16) for correctness."""
    w1, b1, w2, b2, w3, b3 = params
    w1, w2, w3 = (w.astype(jnp.float32) for w in (w1, w2, w3))
    h1 = _leaky_relu(z @ w1 + b1)
    h2 = _leaky_relu(h1 @ w2 + b2)
    return jax.nn.sigmoid(h2 @ w3 + b3).reshape(z.shape[0], 256)


if __name__ == "__main__":
    key = jax.random.PRNGKey(0)
    k_params, k_z1, k_z2 = jax.random.split(key, 3)

    params = init_params(k_params)

    # Case 1: small batch, single grid step.
    B1 = 8
    z1 = jax.random.normal(k_z1, (B1, LATENT_DIM), jnp.float32)
    img1 = jax.block_until_ready(generator2_forward(z1, params))
    ref1 = reference_forward(z1, params)
    assert img1.shape == (B1, 256), img1.shape
    # bf16 matmuls vs f32 reference -> loosened tolerance (sigmoid output in [0,1]).
    assert jnp.allclose(img1, ref1, atol=2e-2, rtol=2e-2), "mismatch vs reference (B=8)"

    # Case 2: exercises grid > 1 and batch padding (B=40 with TB=16 -> 3 tiles).
    B2 = 40
    z2 = jax.random.normal(k_z2, (B2, LATENT_DIM), jnp.float32)
    img2 = jax.block_until_ready(generator2_forward(z2, params, tb=16))
    ref2 = reference_forward(z2, params)
    assert img2.shape == (B2, 256), img2.shape
    assert jnp.allclose(img2, ref2, atol=2e-2, rtol=2e-2), "mismatch vs reference (B=40)"

    print("KERNEL_OK")
</pallas_src>

<mosaic_0001>
module attributes {stable_mosaic.version = 11 : i64} {
  func.func @generator2_kernel(%arg0: i32, %arg1: memref<8x32xf32, #tpu.memory_space<vmem>>, %arg2: memref<32x64xbf16, #tpu.memory_space<vmem>>, %arg3: memref<1x64xf32, #tpu.memory_space<vmem>>, %arg4: memref<64x128xbf16, #tpu.memory_space<vmem>>, %arg5: memref<1x128xf32, #tpu.memory_space<vmem>>, %arg6: memref<128x256xbf16, #tpu.memory_space<vmem>>, %arg7: memref<1x256xf32, #tpu.memory_space<vmem>>, %arg8: memref<8x256xf32, #tpu.memory_space<vmem>>) attributes {dimension_semantics = [#tpu.dimension_semantics<parallel>], iteration_bounds = array<i64: 1>, scalar_prefetch = 0 : i64, scratch_operands = 0 : i64, tpu.core_type = #tpu.core_type<tc>, window_params = [{transform_indices = @transform_0, window_bounds = array<i64: 8, 32>}, {pipeline_mode = #tpu.pipeline_mode<synchronous>, transform_indices = @transform_1, window_bounds = array<i64: 32, 64>}, {pipeline_mode = #tpu.pipeline_mode<synchronous>, transform_indices = @transform_2, window_bounds = array<i64: 1, 64>}, {pipeline_mode = #tpu.pipeline_mode<synchronous>, transform_indices = @transform_3, window_bounds = array<i64: 64, 128>}, {pipeline_mode = #tpu.pipeline_mode<synchronous>, transform_indices = @transform_4, window_bounds = array<i64: 1, 128>}, {pipeline_mode = #tpu.pipeline_mode<synchronous>, transform_indices = @transform_5, window_bounds = array<i64: 128, 256>}, {pipeline_mode = #tpu.pipeline_mode<synchronous>, transform_indices = @transform_6, window_bounds = array<i64: 1, 256>}, {transform_indices = @transform_7, window_bounds = array<i64: 8, 256>}]} {
    %c0 = arith.constant 0 : index
    %c0_0 = arith.constant 0 : index
    %0 = vector.load %arg1[%c0, %c0_0] : memref<8x32xf32, #tpu.memory_space<vmem>>, vector<8x32xf32>
    %1 = arith.truncf %0 : vector<8x32xf32> to vector<8x32xbf16>
    %c0_1 = arith.constant 0 : index
    %c0_2 = arith.constant 0 : index
    %2 = vector.load %arg2[%c0_1, %c0_2] : memref<32x64xbf16, #tpu.memory_space<vmem>>, vector<32x64xbf16>
    %cst = arith.constant dense<0.000000e+00> : vector<8x64xf32>
    %3 = tpu.matmul %1, %2, %cst {dimension_numbers = #tpu.dot_dimension_numbers<[1], [0], [0], [1], [0, 0, 1, 1], [], []>} : vector<8x32xbf16>, vector<32x64xbf16>, vector<8x64xf32> -> vector<8x64xf32>
    %c0_3 = arith.constant 0 : index
    %c0_4 = arith.constant 0 : index
    %4 = vector.load %arg3[%c0_3, %c0_4] : memref<1x64xf32, #tpu.memory_space<vmem>>, vector<1x64xf32>
    %5 = vector.broadcast %4 : vector<1x64xf32> to vector<8x64xf32>
    %6 = arith.addf %3, %5 : vector<8x64xf32>
    %cst_5 = arith.constant 0.000000e+00 : f32
    %7 = vector.broadcast %cst_5 : f32 to vector<8x64xf32>
    %8 = arith.cmpf ogt, %6, %7 : vector<8x64xf32>
    %cst_6 = arith.constant 2.000000e-02 : f32
    %9 = vector.broadcast %cst_6 : f32 to vector<8x64xf32>
    %10 = arith.mulf %9, %6 : vector<8x64xf32>
    %11 = arith.select %8, %6, %10 : vector<8x64xi1>, vector<8x64xf32>
    %12 = arith.truncf %11 : vector<8x64xf32> to vector<8x64xbf16>
    %c0_7 = arith.constant 0 : index
    %c0_8 = arith.constant 0 : index
    %13 = vector.load %arg4[%c0_7, %c0_8] : memref<64x128xbf16, #tpu.memory_space<vmem>>, vector<64x128xbf16>
    %cst_9 = arith.constant dense<0.000000e+00> : vector<8x128xf32>
    %14 = tpu.matmul %12, %13, %cst_9 {dimension_numbers = #tpu.dot_dimension_numbers<[1], [0], [0], [1], [0, 0, 1, 1], [], []>} : vector<8x64xbf16>, vector<64x128xbf16>, vector<8x128xf32> -> vector<8x128xf32>
    %c0_10 = arith.constant 0 : index
    %c0_11 = arith.constant 0 : index
    %15 = vector.load %arg5[%c0_10, %c0_11] : memref<1x128xf32, #tpu.memory_space<vmem>>, vector<1x128xf32>
    %16 = vector.broadcast %15 : vector<1x128xf32> to vector<8x128xf32>
    %17 = arith.addf %14, %16 : vector<8x128xf32>
    %cst_12 = arith.constant 0.000000e+00 : f32
    %18 = vector.broadcast %cst_12 : f32 to vector<8x128xf32>
    %19 = arith.cmpf ogt, %17, %18 : vector<8x128xf32>
    %cst_13 = arith.constant 2.000000e-02 : f32
    %20 = vector.broadcast %cst_13 : f32 to vector<8x128xf32>
    %21 = arith.mulf %20, %17 : vector<8x128xf32>
    %22 = arith.select %19, %17, %21 : vector<8x128xi1>, vector<8x128xf32>
    %23 = arith.truncf %22 : vector<8x128xf32> to vector<8x128xbf16>
    %c0_14 = arith.constant 0 : index
    %c0_15 = arith.constant 0 : index
    %24 = vector.load %arg6[%c0_14, %c0_15] : memref<128x256xbf16, #tpu.memory_space<vmem>>, vector<128x256xbf16>
    %cst_16 = arith.constant dense<0.000000e+00> : vector<8x256xf32>
    %25 = tpu.matmul %23, %24, %cst_16 {dimension_numbers = #tpu.dot_dimension_numbers<[1], [0], [0], [1], [0, 0, 1, 1], [], []>} : vector<8x128xbf16>, vector<128x256xbf16>, vector<8x256xf32> -> vector<8x256xf32>
    %c0_17 = arith.constant 0 : index
    %c0_18 = arith.constant 0 : index
    %26 = vector.load %arg7[%c0_17, %c0_18] : memref<1x256xf32, #tpu.memory_space<vmem>>, vector<1x256xf32>
    %27 = vector.broadcast %26 : vector<1x256xf32> to vector<8x256xf32>
    %28 = arith.addf %25, %27 : vector<8x256xf32>
    %29 = arith.negf %28 : vector<8x256xf32>
    %30 = math.exp %29 : vector<8x256xf32>
    %cst_19 = arith.constant 1.000000e+00 : f32
    %31 = vector.broadcast %cst_19 : f32 to vector<8x256xf32>
    %32 = arith.addf %31, %30 : vector<8x256xf32>
    %33 = arith.divf %31, %32 : vector<8x256xf32>
    %c0_20 = arith.constant 0 : index
    %c0_21 = arith.constant 0 : index
    %34 = vector.load %arg8[%c0_20, %c0_21] : memref<8x256xf32, #tpu.memory_space<vmem>>, vector<8x256xf32>
    tpu.vector_store %arg8[%c0_20, %c0_21], %33 {strides = array<i32>} : memref<8x256xf32, #tpu.memory_space<vmem>>, vector<8x256xf32>,
    return
  }
  func.func @transform_0(%arg0: i32) -> (i32, i32) {
    %c0_i32 = arith.constant 0 : i32
    %c0_i32_0 = arith.constant 0 : i32
    return %arg0, %c0_i32 : i32, i32
  }
  func.func @transform_1(%arg0: i32) -> (i32, i32) {
    %c0_i32 = arith.constant 0 : i32
    %c0_i32_0 = arith.constant 0 : i32
    %c0_i32_1 = arith.constant 0 : i32
    return %c0_i32, %c0_i32_0 : i32, i32
  }
  func.func @transform_2(%arg0: i32) -> (i32, i32) {
    %c0_i32 = arith.constant 0 : i32
    %c0_i32_0 = arith.constant 0 : i32
    %c0_i32_1 = arith.constant 0 : i32
    return %c0_i32, %c0_i32_0 : i32, i32
  }
  func.func @transform_3(%arg0: i32) -> (i32, i32) {
    %c0_i32 = arith.constant 0 : i32
    %c0_i32_0 = arith.constant 0 : i32
    %c0_i32_1 = arith.constant 0 : i32
    return %c0_i32, %c0_i32_0 : i32, i32
  }
  func.func @transform_4(%arg0: i32) -> (i32, i32) {
    %c0_i32 = arith.constant 0 : i32
    %c0_i32_0 = arith.constant 0 : i32
    %c0_i32_1 = arith.constant 0 : i32
    return %c0_i32, %c0_i32_0 : i32, i32
  }
  func.func @transform_5(%arg0: i32) -> (i32, i32) {
    %c0_i32 = arith.constant 0 : i32
    %c0_i32_0 = arith.constant 0 : i32
    %c0_i32_1 = arith.constant 0 : i32
    return %c0_i32, %c0_i32_0 : i32, i32
  }
  func.func @transform_6(%arg0: i32) -> (i32, i32) {
    %c0_i32 = arith.constant 0 : i32
    %c0_i32_0 = arith.constant 0 : i32
    %c0_i32_1 = arith.constant 0 : i32
    return %c0_i32, %c0_i32_0 : i32, i32
  }
  func.func @transform_7(%arg0: i32) -> (i32, i32) {
    %c0_i32 = arith.constant 0 : i32
    %c0_i32_0 = arith.constant 0 : i32
    return %arg0, %c0_i32 : i32, i32
  }
}

</mosaic_0001>

<bundles_post_ra>
// kernel: generator2_forward.1
= control target key start
LH: loop header
LB: loop body
LE: loop exit
PB: predicated region body
PF: predicated region fallthrough
CT: control target
= control target key end

     0   :  { %12 = vsyncpa [#allocation3], 0  ;;  %s772_s0 = inlined_call_operand.hbm [shape: f32[8,32], index: 0, kind: input, shape index: {}]   ;;  %s773_s1 = inlined_call_operand.hbm [shape: bf16[32,64], index: 1, kind: input, shape index: {}]   ;;  %s774_s2 = inlined_call_operand.vmem [shape: f32[1,64], index: 2, kind: input, shape index: {}]   ;;  %s775_s3 = inlined_call_operand.hbm [shape: bf16[64,128], index: 3, kind: input, shape index: {}]   ;;  %s776_s4 = inlined_call_operand.vmem [shape: f32[1,128], index: 4, kind: input, shape index: {}]   ;;  %s777_s5 = inlined_call_operand.hbm [shape: bf16[128,256], index: 5, kind: input, shape index: {}]   ;;  %s778_s6 = inlined_call_operand.vmem [shape: f32[1,256], index: 6, kind: input, shape index: {}]   ;;  %s779_s7 = inlined_call_operand.hbm [shape: f32[8,256], index: 7, kind: output, shape index: {}]  }
   0x1   :  { %13 = vsyncpa [#allocation6], 0 }
   0x2   :  { %14 = vsyncpa [#allocation9], 0 }
   0x3   :  { %15 = vsyncpa [#allocation4], 0  ;;  %s645_s24 = smov [#allocation5]   ;;  %s527_s28 = scalar_lea.hbm %s773_s1, 256 }
   0x4   :  { %s31_s25 = sshll.u32 %s645_s24, 4  ;;  %p528_p0 = scmp.ne.s32.totalorder %s773_s1, %s527_s28  ;;  %s32_s25 = int_to_ptr.vmem [resolvable:$true] %s31_s25 }
   0x5   :  { %p531_p1 = scmp.lt.u32.totalorder %s527_s28, %s773_s1 }
   0x7   :  { %p533_p2 = pnand %p531_p1, %p528_p0 }
   0x9   :  { %536 = shalt.err (!%p533_p2)
}
   0xa   :  { %s537_s10 = scalar_lea.vmem %s32_s25, 256  ;;  %p542_p4 = scmp.lt.s32.totalorder %s32_s25, %s32_s25 }
   0xb   :  { %p538_p3 = scmp.ne.s32.totalorder %s32_s25, %s537_s10  ;;  %p543_p5 = scmp.lt.s32.totalorder %s537_s10, %s537_s10 }
   0xd   :  { %p544_p6 = por %p543_p5, %p542_p4 }
   0xf   :  { %p545_p7 = pnand %p544_p6, %p538_p3 }
  0x11   :  { %548 = shalt.err (!%p545_p7)
}
  0x12   :  { %s646_s11 = smov 64   ;;  %s647_s12 = smov 4  }
  0x13   :  { %37 = dma.hbm_to_vmem [thread:$0]  %s773_s1, 256, %s32_s25, [#allocation6], %s646_s11, %s646_s11, %s647_s12  }
  0x14   :  { %s648_s15 = smov [#allocation2]   ;;  %s649_s17 = smov [#allocation7]  }
  0x15   :  { %s22_s16 = sshll.u32 %s648_s15, 4  ;;  %s45_s18 = sshll.u32 %s649_s17, 4  ;;  %s23_s16 = int_to_ptr.vmem [resolvable:$true] %s22_s16  ;;  %s46_s18 = int_to_ptr.vmem [resolvable:$true] %s45_s18 }
  0x16   :  { %s549_s21 = scalar_lea.hbm %s772_s0, 128 }
  0x17   :  { %p550_p8 = scmp.ne.s32.totalorder %s772_s0, %s549_s21  ;;  %p553_p9 = scmp.lt.u32.totalorder %s549_s21, %s772_s0 }
  0x19   :  { %p555_p10 = pnand %p553_p9, %p550_p8 }
  0x1b   :  { %558 = shalt.err (!%p555_p10)
}
  0x1c   :  { %s559_s1 = scalar_lea.vmem %s23_s16, 128  ;;  %p564_p12 = scmp.lt.s32.totalorder %s23_s16, %s23_s16 }
  0x1d   :  { %p560_p11 = scmp.ne.s32.totalorder %s23_s16, %s559_s1  ;;  %p565_p13 = scmp.lt.s32.totalorder %s559_s1, %s559_s1 }
  0x1f   :  { %p566_p0 = por %p565_p13, %p564_p12 }
  0x21   :  { %p567_p1 = pnand %p566_p0, %p560_p11 }
  0x23   :  { %570 = shalt.err (!%p567_p1)
}
  0x24   :  { %25 = dma.hbm_to_vmem [thread:$0]  %s772_s0, 128, %s23_s16, [#allocation3]  }
  0x25   :  { %s571_s30 = scalar_lea.hbm %s775_s3, 512 }
  0x26   :  { %p572_p2 = scmp.ne.s32.totalorder %s775_s3, %s571_s30  ;;  %p575_p3 = scmp.lt.u32.totalorder %s571_s30, %s775_s3 }
  0x28   :  { %p577_p4 = pnand %p575_p3, %p572_p2 }
  0x2a   :  { %580 = shalt.err (!%p577_p4)
}
  0x2b   :  { %s581_s14 = scalar_lea.vmem %s46_s18, 512  ;;  %p586_p6 = scmp.lt.s32.totalorder %s46_s18, %s46_s18 }
  0x2c   :  { %p582_p5 = scmp.ne.s32.totalorder %s46_s18, %s581_s14  ;;  %p587_p7 = scmp.lt.s32.totalorder %s581_s14, %s581_s14 }
  0x2e   :  { %p588_p8 = por %p587_p7, %p586_p6 }
  0x30   :  { %p589_p9 = pnand %p588_p8, %p582_p5 }
  0x32   :  { %592 = shalt.err (!%p589_p9)
}
  0x33   :  { %51 = dma.hbm_to_vmem [thread:$0]  %s775_s3, 512, %s46_s18, [#allocation6], %s646_s11, %s646_s11, %s647_s12  }
  0x34   :  { %s650_s16 = smov [#allocation8]   ;;  %s593_s21 = scalar_lea.hbm %s777_s5, 2048 }
  0x35   :  { %s59_s17 = sshll.u32 %s650_s16, 4  ;;  %p594_p10 = scmp.ne.s32.totalorder %s777_s5, %s593_s21  ;;  %s60_s17 = int_to_ptr.vmem [resolvable:$true] %s59_s17 }
  0x36   :  { %p597_p11 = scmp.lt.u32.totalorder %s593_s21, %s777_s5 }
  0x38   :  { %p599_p12 = pnand %p597_p11, %p594_p10 }
  0x3a   :  { %602 = shalt.err (!%p599_p12)
}
  0x3b   :  { %s603_s1 = scalar_lea.vmem %s60_s17, 2048  ;;  %p608_p0 = scmp.lt.s32.totalorder %s60_s17, %s60_s17 }
  0x3c   :  { %p604_p13 = scmp.ne.s32.totalorder %s60_s17, %s603_s1  ;;  %p609_p1 = scmp.lt.s32.totalorder %s603_s1, %s603_s1 }
  0x3e   :  { %p610_p2 = por %p609_p1, %p608_p0 }
  0x40   :  { %p611_p3 = pnand %p610_p2, %p604_p13 }
  0x42   :  { %614 = shalt.err (!%p611_p3)
}
  0x43   :  { %s651_s3 = smov 128   ;;  %s652_s11 = smov 8  }
  0x44   :  { %65 = dma.hbm_to_vmem [thread:$0]  %s777_s5, 2048, %s60_s17, [#allocation9], %s651_s3, %s651_s3, %s652_s11  }
  0x45   :  { %637 = dma.done.wait [#allocation3], 128  }
  0x46   :  { %638 = vsyncadd [#allocation3], 4294967168 }
  0x47   :  { %639 = dma.done.wait [#allocation6], 768  }
  0x48   :  { %640 = vsyncadd [#allocation6], 4294966528 }
  0x49   :  { %641 = dma.done.wait [#allocation9], 2048  }
  0x4a   :  { %642 = vsyncadd [#allocation9], 4294965248  ;;  %v653_v0 = vmov 0.0   ;;  %vm654_vm0 = vmmov 0   ;;  %v489_v1 = vld [vmem:[#allocation5] sm:$0xff]   ;;  %v490_v2 = vld [vmem:[#allocation5 + $0x8] sm:$0xff]   ;;  %v259_v44 = vlaneseq }
  0x4b   :  { %457 = vmatprep.subr.bf16.mxu1 %v653_v0  ;;  %461 = vmatprep.mubr.msk.bf16.mxu1 %vm654_vm0, %v653_v0  ;;  %v81_v3 = vld [vmem:[#allocation2] sm:$0xff]  ;;  %v491_v4 = vld [vmem:[#allocation7] sm:$0xff]   ;;  %vm106_vm1 = vcmask 261120   ;;  %v493_v7 = vld [vmem:[#allocation7 + $0x10] sm:$0xff]   ;;  %vm193_vm3 = vcmask 523264   ;;  %v655_v34 = vmov 0  }
  0x4c   :  { %458 = vmatpush3.bf16.msra.mxu1 %v489_v1  ;;  %v82_v5 = vpack.c.bf16 %v81_v3, %v81_v3  ;;  %v492_v6 = vld [vmem:[#allocation7 + $0x8] sm:$0xff]   ;;  %v494_v8 = vld [vmem:[#allocation7 + $0x18] sm:$0xff]   ;;  %381 = vmatprep.mubr.bf16.mxu0 %v655_v34  ;;  %v260_v45 = vshrl.u32 %v259_v44, 7 }
  0x4d   :  { %459 = vmatprep.subr.bf16.mxu1 %v653_v0  ;;  %v495_v9 = vld [vmem:[#allocation8 + $0x4] ss:$8 sps:$4 sm:$0xff]   ;;  %v497_v10 = vld [vmem:[#allocation8] ss:$8 sps:$4 sm:$0xff]   ;;  %v498_v11 = vld [vmem:[#allocation8 + $0x14] ss:$8 sps:$4 sm:$0xff]  }
  0x4e   :  { %349 = vmatprep.subr.bf16.mxu0 %v495_v9  ;;  %v500_v12 = vld [vmem:[#allocation8 + $0x10] ss:$8 sps:$4 sm:$0xff]   ;;  %v501_v13 = vld [vmem:[#allocation8 + $0x24] ss:$8 sps:$4 sm:$0xff]   ;;  %v503_v14 = vld [vmem:[#allocation8 + $0x20] ss:$8 sps:$4 sm:$0xff]  }
  0x4f   :  { %350 = vmatpush1.bf16.msra.mxu0 %v497_v10  ;;  %v504_v15 = vld [vmem:[#allocation8 + $0x34] ss:$8 sps:$4 sm:$0xff]   ;;  %v506_v16 = vld [vmem:[#allocation8 + $0x30] ss:$8 sps:$4 sm:$0xff]   ;;  %v507_v17 = vld [vmem:[#allocation8 + $0x44] ss:$8 sps:$4 sm:$0xff]  }
  0x50   :  { %460 = vmatpush3.bf16.msra.mxu1 %v490_v2  ;;  %351 = vmatprep.subr.bf16.mxu0 %v498_v11  ;;  %v509_v18 = vld [vmem:[#allocation8 + $0x40] ss:$8 sps:$4 sm:$0xff]   ;;  %v510_v19 = vld [vmem:[#allocation8 + $0x54] ss:$8 sps:$4 sm:$0xff]   ;;  %v512_v20 = vld [vmem:[#allocation8 + $0x50] ss:$8 sps:$4 sm:$0xff]  }
  0x51   :  { %465 = vmatprep.subr.bf16.mxu1 %v653_v0  ;;  %v421_v21 = vld [vmem:[%s774_s2] ss:$0 sm:$0xff]  ;;  %v513_v30 = vld [vmem:[#allocation8 + $0x64] ss:$8 sps:$4 sm:$0xff]   ;;  %v516_v32 = vld [vmem:[#allocation8 + $0x74] ss:$8 sps:$4 sm:$0xff]  }
  0x52   :  { %v515_v31 = vld [vmem:[#allocation8 + $0x60] ss:$8 sps:$4 sm:$0xff]   ;;  %v518_v33 = vld [vmem:[#allocation8 + $0x70] ss:$8 sps:$4 sm:$0xff]   ;;  %v261_v46 = vsub.s32 0, %v260_v45  ;;  %v265_v48 = vsub.s32 1, %v260_v45 }
  0x53   :  { %462 = vmatmul.mubr.msk.bf16.vlgmr.msra.gmra.mrb[0].mxu1 %vm106_vm1, %v82_v5  ;;  %352 = vmatpush1.bf16.msra.mxu0 %v500_v12  ;;  %v425_v35 = vld [vmem:[%s776_s4] ss:$0 sm:$0xff]  ;;  %s656_s4 = smov [#allocation10]  }
  0x54   :  { %466 = vmatpush3.bf16.msra.mxu1 %v491_v4  ;;  %473 = vmatprep.mubr.msk.bf16.mxu1 %vm654_vm0, %v653_v0  ;;  %v257_v47 = vld [vmem:[%s778_s6] sm:$0x3]  ;;  %s410_s6 = sshll.u32 %s656_s4, 4  ;;  %s411_s6 = int_to_ptr.vmem [resolvable:$true] %s410_s6 }
  0x55   :  { %467 = vmatprep.subr.bf16.mxu1 %v653_v0  ;;  %353 = vmatprep.subr.bf16.mxu0 %v501_v13  ;;  %v262_v49 = vrot.slane %v257_v47, %v261_v46  ;;  %v266_v50 = vrot.slane %v257_v47, %v265_v48  ;;  %s615_s30 = scalar_lea.vmem %s411_s6, 256  ;;  %p620_p5 = scmp.lt.s32.totalorder %s411_s6, %s411_s6 }
  0x56   :  { %p616_p4 = scmp.ne.s32.totalorder %s411_s6, %s615_s30  ;;  %p621_p6 = scmp.lt.s32.totalorder %s615_s30, %s615_s30 }
  0x57   :  { %354 = vmatpush1.bf16.msra.mxu0 %v503_v14 }
  0x58   :  { %468 = vmatpush3.bf16.msra.mxu1 %v492_v6  ;;  %355 = vmatprep.subr.bf16.mxu0 %v504_v15  ;;  %p622_p7 = por %p621_p6, %p620_p5 }
  0x59   :  { %469 = vmatprep.subr.bf16.mxu1 %v653_v0 }
  0x5a   :  { %p623_p8 = pnand %p622_p7, %p616_p4 }
  0x5b   :  { %356 = vmatpush1.bf16.msra.mxu0 %v506_v16 }
  0x5c   :  { %470 = vmatpush3.bf16.msra.mxu1 %v493_v7  ;;  %357 = vmatprep.subr.bf16.mxu0 %v507_v17 }
  0x5d   :  { %471 = vmatprep.subr.bf16.mxu1 %v653_v0 }
  0x5f   :  { %358 = vmatpush1.bf16.msra.mxu0 %v509_v18 }
  0x60   :  { %472 = vmatpush3.bf16.msra.mxu1 %v494_v8  ;;  %359 = vmatprep.subr.bf16.mxu0 %v510_v19 }
  0x63   :  { %360 = vmatpush1.bf16.msra.mxu0 %v512_v20 }
  0x64   :  { %361 = vmatprep.subr.bf16.mxu0 %v513_v30 }
  0x67   :  { %362 = vmatpush1.bf16.msra.mxu0 %v515_v31 }
  0x68   :  { %363 = vmatprep.subr.bf16.mxu0 %v516_v32 }
  0x6b   :  { %364 = vmatpush1.bf16.msra.mxu0 %v518_v33 }
 0x126   :  { %v144_v22 = vpop.f32.mrb[0].mxu1 }
 0x127   :  { %v145_v23 = vadd.f32 %v421_v21, %v144_v22  ;;  %v463_v24 = vpop.f32.mrb[1].mxu1 }
 0x128   :  { %v147_v25 = vpop.f32.mrb[2].mxu1 }
 0x129   :  { %vm150_vm2 = vcmp.gt.f32.partialorder %v145_v23, 0.0  ;;  %v151_v26 = vmul.f32 0.02, %v145_v23  ;;  %v464_v27 = vpop.f32.mrb[3].mxu1 }
 0x12b   :  { %v152_v28 = vsel %vm150_vm2, %v145_v23, %v151_v26 }
 0x12c   :  { %v153_v29 = vpack.c.bf16 %v152_v28, %v152_v28 }
 0x12e   :  { %474 = vmatmul.mubr.msk.bf16.vlgmr.msra.gmra.mrb[4].mxu1 %vm193_vm3, %v153_v29 }
 0x201   :  { %v231_v36 = vpop.f32.mrb[4].mxu1 }
 0x202   :  { %v232_v37 = vadd.f32 %v425_v35, %v231_v36  ;;  %v475_v38 = vpop.f32.mrb[5].mxu1 }
 0x203   :  { %v234_v39 = vpop.f32.mrb[6].mxu1 }
 0x204   :  { %vm237_vm4 = vcmp.gt.f32.partialorder %v232_v37, 0.0  ;;  %v238_v40 = vmul.f32 0.02, %v232_v37  ;;  %v476_v41 = vpop.f32.mrb[7].mxu1 }
 0x206   :  { %v239_v42 = vsel %vm237_vm4, %v232_v37, %v238_v40 }
 0x207   :  { %v240_v43 = vpack.c.bf16 %v239_v42, %v239_v42 }
 0x209   :  { %382 = vmatmul.mubr.bf16.vlgmr.msra.gmra.mrb[0].mxu0 %v240_v43 }
 0x2dc   :  { %v383_v51 = vpop.f32.mrb[0].mxu0 }
 0x2dd   :  { %v384_v52 = vadd.f32 %v383_v51, %v262_v49  ;;  %v385_v53 = vpop.f32.mrb[1].mxu0 }
 0x2de   :  { %v386_v54 = vadd.f32 %v385_v53, %v266_v50  ;;  %v387_v55 = vpop.f32.mrb[2].mxu0 }
 0x2df   :  { %v447_v56 = vmul.f32 -1.442695, %v384_v52  ;;  %v388_v57 = vpop.f32.mrb[3].mxu0 }
 0x2e0   :  { %v448_v58 = vmul.f32 -1.442695, %v386_v54 }
 0x2e1   :  { %519 = vpow2.f32 %v447_v56 }
 0x2e2   :  { %521 = vpow2.f32 %v448_v58 }
 0x2eb   :  { %v520_v59 = vpop.eup %519 }
 0x2ec   :  { %v522_v60 = vpop.eup %521  ;;  %v396_v61 = vadd.f32 1.0, %v520_v59 }
 0x2ed   :  { %v397_v62 = vadd.f32 1.0, %v522_v60 }
 0x2ee   :  { %523 = vrcp.f32 %v396_v61 }
 0x2ef   :  { %525 = vrcp.f32 %v397_v62 }
 0x2f8   :  { %v524_v63 = vpop.eup %523 }
 0x2f9   :  { %v526_v0 = vpop.eup %525  ;;  %402 = vst [vmem:[#allocation10] sm:$0xff] %v524_v63 }
 0x2fa   :  { %403 = vst [vmem:[#allocation10 + $0x8] sm:$0xff] %v526_v0 }
 0x2fb   :  { %626 = shalt.err (!%p623_p8)
}
 0x2fc   :  { %s627_s10 = scalar_lea.hbm %s779_s7, 256 }
 0x2fd   :  { %p628_p9 = scmp.ne.s32.totalorder %s779_s7, %s627_s10  ;;  %p631_p10 = scmp.lt.u32.totalorder %s627_s10, %s779_s7 }
 0x2ff   :  { %p633_p11 = pnand %p631_p10, %p628_p9 }
 0x301   :  { %636 = shalt.err (!%p633_p11)
}
 0x302   :  { %413 = dma.vmem_to_hbm [thread:$0]  %s411_s6, 256, %s779_s7, [#allocation4]  }
 0x303   :  { %643 = dma.done.wait [#allocation4], 256  }
 0x304   :  { %644 = vsyncadd [#allocation4], 4294967040 }
 0x305   :  { %417 = vsyncpa [#allocation3], 1 }
 0x306   :  { %418 = vsyncpa [#allocation6], 1 }
 0x307   :  { %419 = vsyncpa [#allocation9], 1 }
 0x308   :  { %420 = vsyncpa [#allocation4], 1 }

</bundles_post_ra>
